<compile_context>
chip_gen: v6e
topology: v6e:2x2x1
jax: 0.10.0
libtpu: 0.0.40
codegen_flags: <defaults>
</compile_context>

<pallas_src>
import functools
import math

import jax
import jax.numpy as jnp
from jax.experimental import pallas as pl
from jax.experimental.pallas import tpu as pltpu


def _ecaapmp_kernel(w_ref, x_ref, o_ref, *, chunk_b, n_chunks, K):
    """One grid step over a (Bt, C, HW) block.

    w_ref : SMEM (2K,) f32  — [w_avg/HW (K taps); w_amp (K taps)]
    x_ref : VMEM (Bt, C, HW) input block
    o_ref : VMEM (Bt, C, HW) output block
    """
    Bt, C, HW = x_ref.shape
    P = K // 2

    # ---- Pass 1: streaming per-channel reductions (sum & max over HW). -----
    # Chunks are read straight from the VMEM block (no block-sized f32 temp).
    sums, maxs = [], []
    for i in range(n_chunks):                      # static & small (<= 8)
        chunk = x_ref[pl.ds(i * chunk_b, chunk_b), :, :].astype(jnp.float32)
        sums.append(jnp.sum(chunk, axis=-1, keepdims=True))   # (cb, C, 1)
        maxs.append(jnp.max(chunk, axis=-1, keepdims=True))   # (cb, C, 1)
    s = sums[0] if n_chunks == 1 else jnp.concatenate(sums, axis=0)  # (Bt,C,1)
    m = maxs[0] if n_chunks == 1 else jnp.concatenate(maxs, axis=0)  # (Bt,C,1)

    # ---- Tiny channel conv + sigmoid, all on register values (no scratch). -
    if P > 0:
        zpad = jnp.zeros((Bt, P, 1), jnp.float32)
        s_p = jnp.concatenate([zpad, s, zpad], axis=1)   # (Bt, C+2P, 1)
        m_p = jnp.concatenate([zpad, m, zpad], axis=1)
    else:
        s_p, m_p = s, m
    acc = jnp.zeros((Bt, C, 1), jnp.float32)
    for j in range(K):                              # K is static & tiny
        acc = acc + w_ref[j] * s_p[:, j:j + C, :]        # avg row (1/HW folded)
        acc = acc + w_ref[K + j] * m_p[:, j:j + C, :]    # max row
    gate = jax.nn.sigmoid(acc)                           # (Bt, C, 1)

    # ---- Pass 2: streaming scale-store (re-read x_ref, broadcast over HW). -
    for i in range(n_chunks):
        sl = pl.ds(i * chunk_b, chunk_b)
        g = gate[i * chunk_b:(i + 1) * chunk_b]          # (cb, C, 1)
        xin = x_ref[sl, :, :].astype(jnp.float32)
        o_ref[sl, :, :] = (xin * g).astype(o_ref.dtype)


def ecaapmp(x, conv_weight, *, block_b=None):
    """ECAAPMP forward.

    x           : (B, C, H, W)
    conv_weight : (1, 2, K) Conv1d(2, 1, K, padding=K//2, bias=False) weight;
                  row 0 multiplies the avg-pooled vector, row 1 the max-pooled
                  vector (matches torch.cat([avg, amp], dim=1)).
    """
    B, C, H, W = x.shape
    HW = H * W
    K = int(conv_weight.shape[-1])
    elt = jnp.dtype(x.dtype).itemsize
    bytes_per_sample = C * HW * elt

    # Fold 1/HW into the avg-row weights: the kernel sums, never divides.
    w = conv_weight.reshape(2, K).astype(jnp.float32)
    w_flat = jnp.concatenate([w[0] / float(HW), w[1]], axis=0)   # (2K,)

    # Block-size heuristic: ~4 MiB blocks amortize the ~0.35us/step overhead,
    # but keep >= ~4 grid steps when batch allows (pipelining + v7x 2 cores).
    if block_b is None:
        target_bytes = 4 << 20
        block_b = max(1, target_bytes // bytes_per_sample)
        block_b = min(block_b, max(1, -(-B // 4)))     # >= ~4 steps if possible
    block_b = int(max(1, min(block_b, B)))

    # cdiv grid + zero-padded batch instead of shrinking block_b for awkward B.
    grid_b = -(-B // block_b)
    B_pad = grid_b * block_b
    x_flat = x.reshape(B, C, HW)
    if B_pad != B:
        x_flat = jnp.pad(x_flat, ((0, B_pad - B), (0, 0), (0, 0)))

    # In-kernel streaming granularity: ~512 KiB live per chunk.
    # TODO(synk): for very large single-sample C*HW the reduction should also
    # be chunked over HW (and HW tiled across the grid); not needed here.
    chunk_b = max(1, min(block_b, (512 << 10) // max(1, bytes_per_sample)))
    while block_b % chunk_b:
        chunk_b -= 1
    n_chunks = block_b // chunk_b

    block_bytes = block_b * bytes_per_sample
    # Double-buffered in+out = 4x block; cap the scoped limit at 48 MiB so it
    # also fits v7x's 64 MiB physical VMEM (plenty for v5e/v6e's 128 MiB).
    vmem_limit = int(min(48 << 20, max(32 << 20, 6 * block_bytes)))

    kernel = functools.partial(
        _ecaapmp_kernel, chunk_b=chunk_b, n_chunks=n_chunks, K=K)

    cost = pl.CostEstimate(
        flops=int(3 * B_pad * C * HW),
        transcendentals=int(B_pad * C),
        bytes_accessed=int(2 * B_pad * C * HW * elt),
    )

    out_flat = pl.pallas_call(
        kernel,
        out_shape=jax.ShapeDtypeStruct((B_pad, C, HW), x.dtype),
        grid_spec=pltpu.PrefetchScalarGridSpec(
            num_scalar_prefetch=0,
            grid=(grid_b,),
            in_specs=[
                pl.BlockSpec(memory_space=pltpu.MemorySpace.SMEM),  # conv wts
                # TODO(synk): if HW % 128 != 0 (e.g. 7x7 maps) a channel-last
                # (Bt, HW, C) layout would keep stores lane-dense; HW=256 here.
                pl.BlockSpec((block_b, C, HW), lambda b: (b, 0, 0)),
            ],
            out_specs=pl.BlockSpec((block_b, C, HW), lambda b: (b, 0, 0)),
        ),
        compiler_params=pltpu.CompilerParams(
            dimension_semantics=("parallel",),
            vmem_limit_bytes=vmem_limit,
        ),
        cost_estimate=cost,
    )(w_flat, x_flat)

    if B_pad != B:
        out_flat = out_flat[:B]
    return out_flat.reshape(B, C, H, W)


def _reference(x, conv_weight):
    """Pure-JAX re-implementation of ECAAPMP.forward."""
    B, C, H, W = x.shape
    K = conv_weight.shape[-1]
    P = K // 2
    avg = jnp.mean(x, axis=(2, 3))                       # (B, C)
    amp = jnp.max(x, axis=(2, 3))                        # (B, C)
    inp = jnp.stack([avg, amp], axis=1)                  # (B, 2, C)
    padded = jnp.pad(inp, ((0, 0), (0, 0), (P, P)))
    out = jnp.zeros((B, C), jnp.float32)
    for ic in range(2):
        for j in range(K):
            out = out + conv_weight[0, ic, j] * padded[:, ic, j:j + C]
    gate = jax.nn.sigmoid(out)[:, :, None, None]
    return x * gate


if __name__ == "__main__":
    B, C, H, W = 8, 16, 16, 16

    # ECA kernel size from channel count (same formula as ECAAPMP.__init__,
    # gamma=2, b=1): C=16 -> ks=3, padding=1.
    gamma, b_const = 2, 1
    ks = int(abs((math.log(C, 2) + b_const) / gamma))
    ks = ks if ks % 2 else ks + 1

    key = jax.random.PRNGKey(0)
    kx, kw = jax.random.split(key)
    x = jax.random.normal(kx, (B, C, H, W), jnp.float32)
    conv_w = 0.5 * jax.random.normal(kw, (1, 2, ks), jnp.float32)

    ref = _reference(x, conv_w)

    # Default heuristic: block_b=2 -> 4 pipelined grid steps.
    out = jax.block_until_ready(ecaapmp(x, conv_w))
    assert out.shape == (B, C, H, W)
    assert jnp.allclose(out, ref, atol=1e-4, rtol=1e-4), \
        float(jnp.max(jnp.abs(out - ref)))

    # Non-divisible batch tiling: block_b=3 -> cdiv grid of 3 with zero pad.
    out2 = jax.block_until_ready(ecaapmp(x, conv_w, block_b=3))
    assert jnp.allclose(out2, ref, atol=1e-4, rtol=1e-4), \
        float(jnp.max(jnp.abs(out2 - ref)))

    print("KERNEL_OK")
</pallas_src>

<mosaic_0001>
module attributes {stable_mosaic.version = 11 : i64} {
  func.func @_ecaapmp_kernel(%arg0: i32, %arg1: memref<6xf32, #tpu.memory_space<smem>>, %arg2: memref<2x16x256xf32, #tpu.memory_space<vmem>>, %arg3: memref<2x16x256xf32, #tpu.memory_space<vmem>>) attributes {dimension_semantics = [#tpu.dimension_semantics<parallel>], iteration_bounds = array<i64: 4>, scalar_prefetch = 0 : i64, scratch_operands = 0 : i64, tpu.core_type = #tpu.core_type<tc>, window_params = [{transform_indices = @transform_0, window_bounds = array<i64: 6>}, {transform_indices = @transform_1, window_bounds = array<i64: 2, 16, 256>}, {transform_indices = @transform_2, window_bounds = array<i64: 2, 16, 256>}]} {
    %c0 = arith.constant 0 : index
    %c0_0 = arith.constant 0 : index
    %c0_1 = arith.constant 0 : index
    %0 = vector.load %arg2[%c0, %c0_0, %c0_1] : memref<2x16x256xf32, #tpu.memory_space<vmem>>, vector<2x16x256xf32>
    %cst = arith.constant dense<0.000000e+00> : vector<2x16xf32>
    %1 = vector.multi_reduction <add>, %0, %cst [2] : vector<2x16x256xf32> to vector<2x16xf32>
    %2 = vector.shape_cast %1 : vector<2x16xf32> to vector<2x16x1xf32>
    %cst_2 = arith.constant dense<0xFF800000> : vector<2x16xf32>
    %3 = vector.multi_reduction <maximumf>, %0, %cst_2 [2] : vector<2x16x256xf32> to vector<2x16xf32>
    %4 = vector.shape_cast %3 : vector<2x16xf32> to vector<2x16x1xf32>
    %cst_3 = arith.constant 0.000000e+00 : f32
    %5 = vector.broadcast %cst_3 : f32 to vector<2x1x1xf32>
    %6 = tpu.concatenate %5, %2, %5 in 1 : vector<2x1x1xf32>, vector<2x16x1xf32>, vector<2x1x1xf32> -> vector<2x18x1xf32>
    %7 = tpu.concatenate %5, %4, %5 in 1 : vector<2x1x1xf32>, vector<2x16x1xf32>, vector<2x1x1xf32> -> vector<2x18x1xf32>
    %cst_4 = arith.constant 0.000000e+00 : f32
    %8 = vector.broadcast %cst_4 : f32 to vector<2x16x1xf32>
    %c0_5 = arith.constant 0 : index
    %9 = memref.load %arg1[%c0_5] : memref<6xf32, #tpu.memory_space<smem>>
    %10 = vector.extract_strided_slice %6 {offsets = [0, 0, 0], sizes = [2, 16, 1], strides = [1, 1, 1]} : vector<2x18x1xf32> to vector<2x16x1xf32>
    %11 = vector.broadcast %9 : f32 to vector<2x16x1xf32>
    %12 = arith.mulf %11, %10 : vector<2x16x1xf32>
    %13 = arith.addf %8, %12 : vector<2x16x1xf32>
    %c3 = arith.constant 3 : index
    %14 = memref.load %arg1[%c3] : memref<6xf32, #tpu.memory_space<smem>>
    %15 = vector.extract_strided_slice %7 {offsets = [0, 0, 0], sizes = [2, 16, 1], strides = [1, 1, 1]} : vector<2x18x1xf32> to vector<2x16x1xf32>
    %16 = vector.broadcast %14 : f32 to vector<2x16x1xf32>
    %17 = arith.mulf %16, %15 : vector<2x16x1xf32>
    %18 = arith.addf %13, %17 : vector<2x16x1xf32>
    %c1 = arith.constant 1 : index
    %19 = memref.load %arg1[%c1] : memref<6xf32, #tpu.memory_space<smem>>
    %20 = vector.extract_strided_slice %6 {offsets = [0, 1, 0], sizes = [2, 16, 1], strides = [1, 1, 1]} : vector<2x18x1xf32> to vector<2x16x1xf32>
    %21 = vector.broadcast %19 : f32 to vector<2x16x1xf32>
    %22 = arith.mulf %21, %20 : vector<2x16x1xf32>
    %23 = arith.addf %18, %22 : vector<2x16x1xf32>
    %c4 = arith.constant 4 : index
    %24 = memref.load %arg1[%c4] : memref<6xf32, #tpu.memory_space<smem>>
    %25 = vector.extract_strided_slice %7 {offsets = [0, 1, 0], sizes = [2, 16, 1], strides = [1, 1, 1]} : vector<2x18x1xf32> to vector<2x16x1xf32>
    %26 = vector.broadcast %24 : f32 to vector<2x16x1xf32>
    %27 = arith.mulf %26, %25 : vector<2x16x1xf32>
    %28 = arith.addf %23, %27 : vector<2x16x1xf32>
    %c2 = arith.constant 2 : index
    %29 = memref.load %arg1[%c2] : memref<6xf32, #tpu.memory_space<smem>>
    %30 = vector.extract_strided_slice %6 {offsets = [0, 2, 0], sizes = [2, 16, 1], strides = [1, 1, 1]} : vector<2x18x1xf32> to vector<2x16x1xf32>
    %31 = vector.broadcast %29 : f32 to vector<2x16x1xf32>
    %32 = arith.mulf %31, %30 : vector<2x16x1xf32>
    %33 = arith.addf %28, %32 : vector<2x16x1xf32>
    %c5 = arith.constant 5 : index
    %34 = memref.load %arg1[%c5] : memref<6xf32, #tpu.memory_space<smem>>
    %35 = vector.extract_strided_slice %7 {offsets = [0, 2, 0], sizes = [2, 16, 1], strides = [1, 1, 1]} : vector<2x18x1xf32> to vector<2x16x1xf32>
    %36 = vector.broadcast %34 : f32 to vector<2x16x1xf32>
    %37 = arith.mulf %36, %35 : vector<2x16x1xf32>
    %38 = arith.addf %33, %37 : vector<2x16x1xf32>
    %39 = arith.negf %38 : vector<2x16x1xf32>
    %40 = math.exp %39 : vector<2x16x1xf32>
    %cst_6 = arith.constant 1.000000e+00 : f32
    %41 = vector.broadcast %cst_6 : f32 to vector<2x16x1xf32>
    %42 = arith.addf %41, %40 : vector<2x16x1xf32>
    %43 = arith.divf %41, %42 : vector<2x16x1xf32>
    %c0_7 = arith.constant 0 : index
    %c0_8 = arith.constant 0 : index
    %c0_9 = arith.constant 0 : index
    %44 = vector.load %arg2[%c0_7, %c0_8, %c0_9] : memref<2x16x256xf32, #tpu.memory_space<vmem>>, vector<2x16x256xf32>
    %45 = vector.broadcast %43 : vector<2x16x1xf32> to vector<2x16x256xf32>
    %46 = arith.mulf %44, %45 : vector<2x16x256xf32>
    %c0_10 = arith.constant 0 : index
    %c0_11 = arith.constant 0 : index
    %c0_12 = arith.constant 0 : index
    %47 = vector.load %arg3[%c0_10, %c0_11, %c0_12] : memref<2x16x256xf32, #tpu.memory_space<vmem>>, vector<2x16x256xf32>
    tpu.vector_store %arg3[%c0_10, %c0_11, %c0_12], %46 {strides = array<i32>} : memref<2x16x256xf32, #tpu.memory_space<vmem>>, vector<2x16x256xf32>,
    return
  }
  func.func @transform_0(%arg0: i32) -> i32 {
    %c0_i32 = arith.constant 0 : i32
    %c0_i32_0 = arith.constant 0 : i32
    return %c0_i32 : i32
  }
  func.func @transform_1(%arg0: i32) -> (i32, i32, i32) {
    %c0_i32 = arith.constant 0 : i32
    %c0_i32_0 = arith.constant 0 : i32
    %c0_i32_1 = arith.constant 0 : i32
    return %arg0, %c0_i32, %c0_i32_0 : i32, i32, i32
  }
  func.func @transform_2(%arg0: i32) -> (i32, i32, i32) {
    %c0_i32 = arith.constant 0 : i32
    %c0_i32_0 = arith.constant 0 : i32
    %c0_i32_1 = arith.constant 0 : i32
    return %arg0, %c0_i32, %c0_i32_0 : i32, i32, i32
  }
}

</mosaic_0001>

<bundles_post_ra>
// kernel: tpu_custom_call.1
= control target key start
LH: loop header
LB: loop body
LE: loop exit
PB: predicated region body
PF: predicated region fallthrough
CT: control target
= control target key end

     0   :  { %7 = vsyncpa [#allocation5], 0  ;;  %s1107_s0 = inlined_call_operand.hbm [shape: f32[6], index: 0, kind: input, shape index: {}]   ;;  %s1108_s1 = inlined_call_operand.hbm [shape: f32[8,16,256], index: 1, kind: input, shape index: {}]   ;;  %s1109_s2 = inlined_call_operand.hbm [shape: f32[8,16,256], index: 2, kind: output, shape index: {}]  }
   0x1   :  { %8 = vsyncpa [#allocation3], 0 }
   0x2   :  { %10 = vsyncpa [#allocation3 + $0x1], 0 }
   0x3   :  { %11 = vsyncpa [#allocation4], 0 }
   0x4   :  { %13 = vsyncpa [#allocation4 + $0x1], 0  ;;  %s803_s9 = smov 0   ;;  %s805_s10 = smov 0  }
   0x5   :  { %s807_s11 = smov 0   ;;  %s809_s12 = smov 0  }
   0x6 LB: > { %s824_s13 = sadd.s32 4294967295, %s778_s12   ;;  %s560_s14 = sadd.s32 4294967294, %s778_s12   ;;  %s778_s12 = sphi %s809_s12, %s1129_s12   ;;  %s774_s11 = sphi %s807_s11, %s1128_s11   ;;  %s770_s10 = sphi %s805_s10, %s1127_s10   ;;  %s766_s9 = sphi %s803_s9, %s1126_s9  }
   0x7   : > { %s828_s15 = sadd.s32 1, %s778_s12   ;;  %s47_s16 = sadd.s32 1, %s774_s11 }
   0x8   : > { %s44_s17 = ssub.s32 %s778_s12, %s828_s15  ;;  %p54_p0 = scmp.ne.s32.totalorder %s774_s11, %s770_s10 }
   0x9   : > { %p45_p1 = scmp.eq.s32.totalorder %s44_s17, 0  ;;  %p55_p2 = scmp.eq.s32.totalorder %s778_s12, 0 }
   0xa   : > { %p60_p3 = scmp.ne.s32.totalorder %s770_s10, %s766_s9  ;;  %p1111_p4 = scmp.eq.s32.totalorder %s824_s13, 0 }
   0xb   : > { %s840_s18 = scalar_select %p45_p1, %s774_s11, %s47_s16  }
   0xc   : > { %p842_p5 = por %p55_p2, %p54_p0  ;;  %p848_p6 = por %p1111_p4, %p60_p3 }
   0xd   : > { %p84_p7 = scmp.eq.s32.totalorder %s824_s13, 3  ;;  %p90_p8 = scmp.eq.s32.totalorder %s560_s14, 3 }
   0xe   : > { %s1115_s20 = scalar_select %p848_p6, 1, 0 }
   0xf   : > { %p561_p9 = scmp.ge.s32.totalorder %s778_s12, 1  ;;  %p97_p10 = scmp.lt.s32.totalorder %s778_s12, 5 }
  0x10   : > { %p855_p11 = por %p84_p7, %p54_p0  ;;  %p859_p12 = por %p90_p8, %p60_p3 }
  0x11   : > { %p863_p13 = pnand %p561_p9, %p97_p10  ;;  %p612_p2 = scmp.lt.s32.totalorder %s778_s12, 4 }
  0x12   : > { %s1116_s21 = scalar_select %p855_p11, 1, 0 }
  0x13   : > { %s1117_s22 = scalar_select %p859_p12, 1, 0 }
  0x14   : > { %s1118_s23 = scalar_select %p863_p13, 1, 0 }
  0x15   : > { %p599_p1 = pneg %p863_p13  ;;  %s119_s24 = sand.u32 1, %s774_s11  }
  0x16   : > { %s588_s25 = sshll.u32 %s778_s12, 10  ;;  %p876_p0 = pnand %p612_p2, %p842_p5 }
  0x17   : > { %p600_p6 = pnand %p599_p1, %p1111_p4  ;;  %s564_s27 = sshll.u32 %s119_s24, 6 }
  0x18   : > { %s780_s28 = smov [#allocation2]   ;;  %s886_s5 = scalar_lea.hbm %s1108_s1, %s588_s25 }
  0x19   : > { %602 = dma.hbm_to_smem (!%p600_p6), %s1107_s0, 16, %s780_s28, [#allocation5]  }
  0x1a   : > { %s123_s6 = scalar_lea.vmem [#allocation6], %s564_s27  ;;  %s890_s8 = scalar_lea.sflag [#allocation3], %s119_s24 }
  0x1b   : > { %s131_s7 = sshll.u32 %s123_s6, 4  ;;  %s682_s14 = scalar_lea.hbm %s886_s5, 1024  ;;  %s888_s7 = int_to_ptr.vmem [resolvable:$true] %s131_s7 }
  0x1c   : > { %p683_p3 = scmp.ne.s32.totalorder %s886_s5, %s682_s14  ;;  %p684_p5 = pneg %p876_p0 }
  0x1d   : > { %s687_s19 = scalar_lea.hbm %s1108_s1, 4096  ;;  %p688_p8 = scmp.lt.s32.totalorder %s886_s5, %s1108_s1 }
  0x1e   : > { %p685_p7 = pnand %p684_p5, %p683_p3  ;;  %p689_p9 = scmp.lt.s32.totalorder %s687_s19, %s682_s14 }
  0x20   : > { %p686_p6 = pneg %p685_p7  ;;  %p690_p10 = por %p689_p9, %p688_p8 }
  0x22   : > { %p691_p1 = pnand %p690_p10, %p686_p6 }
  0x24   : > { %694 = shalt.err (!%p691_p1)
}
  0x25   : > { %s695_s24 = scalar_lea.vmem %s888_s7, 1024  ;;  %s781_s27 = smov [#allocation6]  }
  0x26   : > { %p696_p2 = scmp.ne.s32.totalorder %s888_s7, %s695_s24  ;;  %s700_s29 = sshll.u32 %s781_s27, 4  ;;  %s701_s29 = int_to_ptr.vmem [resolvable:$false] %s700_s29 }
  0x27   : > { %s702_s30 = scalar_lea.vmem %s701_s29, 2048  ;;  %p703_p7 = scmp.lt.s32.totalorder %s888_s7, %s701_s29 }
  0x28   : > { %p698_p4 = pnand %p696_p2, %p684_p5  ;;  %p704_p12 = scmp.lt.s32.totalorder %s702_s30, %s695_s24 }
  0x2a   : > { %p699_p3 = pneg %p698_p4  ;;  %p705_p11 = por %p704_p12, %p703_p7 }
  0x2c   : > { %p706_p13 = pnand %p705_p11, %p699_p3 }
  0x2e   : > { %709 = shalt.err (!%p706_p13)
}
  0x2f   : > { %s782_s3 = smov 256   ;;  %s783_s4 = smov 16  }
  0x30   : > { %606 = dma.hbm_to_vmem [thread:$0]  (!%p876_p0), %s886_s5, 1024, %s888_s7, %s890_s8, %s782_s3, %s782_s3, %s783_s4  }
  0x31   : > { %p1120_p5 = scmp.ne.s32.totalorder %s1118_s23, 0 }
  0x32   : > { %p1121_p4 = scmp.eq.s32.totalorder (!%p1120_p5), %s824_s13, 0 }
  0x33   : > { %143 = sbr.rel (%p1120_p5) target bundleno = 415 (0x19f), region = 28 }
  0x38   : > { %753 = dma.done.wait (%p1121_p4), [#allocation5], 16   ;;  %p1122_p6 = pmov %p1121_p4 }
  0x39   : > { %s918_s6 = sand.u32 1, %s770_s10   ;;  %p1123_p11 = scmp.ne.s32.totalorder %s1115_s20, 0 }
  0x3a   : > { %755 = vsyncadd (%p1122_p6), [#allocation5], 4294967280  ;;  %s570_s14 = sshll.u32 %s918_s6, 6  ;;  %s150_s16 = scalar_lea.sflag [#allocation3], %s918_s6 }
  0x3b   : > { %s153_s26 = scalar_lea.vmem [#allocation6], %s570_s14 }
  0x3c   : > { %757 = dma.done.wait (%p1123_p11), %s150_s16, 1024  }
  0x3d   : > { %759 = vsyncadd (%p1123_p11), %s150_s16, 4294966272 }
  0x3e   : > { %158 = sfence }
  0x3f   : > { %v928_v0 = vld [vmem:[%s153_s26 + $0x20] sm:$0xff]  ;;  %v930_v1 = vld [vmem:[%s153_s26 + $0x28] sm:$0xff]  ;;  %v938_v5 = vld [vmem:[%s153_s26 + $0x30] sm:$0xff]  ;;  %v784_v16 = vmov 0   ;;  %s573_s20 = sld [smem:[#allocation2 + $0x1]]  ;;  %vm213_vm0 = vcmask 1040384  }
  0x40   : > { %v932_v2 = vld [vmem:[%s153_s26] sm:$0xff]  ;;  %v191_v3 = vadd.f32 %v930_v1, %v928_v0  ;;  %v936_v4 = vld [vmem:[%s153_s26 + $0x8] sm:$0xff]  ;;  %v940_v6 = vld [vmem:[%s153_s26 + $0x38] sm:$0xff]  ;;  %v203_v15 = vmax.f32 %v928_v0, %v930_v1  ;;  %654 = vset.pattern.permute.xlu1 %v784_v16  ;;  %653 = vset.pattern.permute.xlu0 %v784_v16  ;;  %s575_s23 = sld [smem:[#allocation2 + $0x2]]  ;;  %vm284_vm1 = vcmask 1046528   ;;  %vm349_vm2 = vcmask 1045504  }
  0x41   : > { %v185_v7 = vadd.f32 %v936_v4, %v932_v2  ;;  %v944_v8 = vld [vmem:[%s153_s26 + $0x10] sm:$0xff]  ;;  %v946_v9 = vld [vmem:[%s153_s26 + $0x18] sm:$0xff]  ;;  %v194_v10 = vadd.f32 %v940_v6, %v938_v5  ;;  %v197_v13 = vmax.f32 %v932_v2, %v936_v4  ;;  %v206_v14 = vmax.f32 %v938_v5, %v940_v6  ;;  %s250_s5 = sld [smem:[#allocation2]]  ;;  %s174_s19 = scalar_lea.vmem [#allocation7], %s570_s14 }
  0x42   : > { %192 = vadd.xlane.f32.xlu1 %v191_v3  ;;  %v188_v11 = vadd.f32 %v946_v9, %v944_v8  ;;  %v200_v12 = vmax.f32 %v944_v8, %v946_v9  ;;  %s574_s7 = sld [smem:[#allocation2 + $0x4]]  ;;  %s590_s25 = sshll.u32 %s824_s13, 10 }
  0x43   : > { %186 = vadd.xlane.f32.xlu0 %v185_v7  ;;  %s576_s8 = sld [smem:[#allocation2 + $0x5]]  ;;  %s475_s28 = sshll.u32 %s174_s19, 4  ;;  %s1063_s28 = int_to_ptr.vmem [resolvable:$true] %s475_s28 }
  0x44   : > { %s572_s17 = sld [smem:[#allocation2 + $0x3]]  ;;  %s1061_s29 = scalar_lea.hbm %s1109_s2, %s590_s25 }
  0x45   : > { %v271_v21 = vstv %s573_s20  ;;  %s461_s13 = scalar_lea.sflag [#allocation4], %s918_s6  ;;  %s710_s30 = scalar_lea.vmem %s1063_s28, 1024 }
  0x46   : > { %195 = vadd.xlane.f32.xlu1 %v194_v10  ;;  %v336_v23 = vstv %s575_s23  ;;  %p711_p12 = scmp.ne.s32.totalorder %s1063_s28, %s710_s30  ;;  %p1124_p13 = scmp.ne.s32.totalorder %s1116_s21, 0 }
  0x47   : > { %189 = vadd.xlane.f32.xlu0 %v188_v11  ;;  %v251_v28 = vstv %s250_s5  ;;  %s785_s3 = smov [#allocation7]  }
  0x48   : > { %v964_v31 = vstv %s574_s7  ;;  %p712_p0 = pnand %p711_p12, %p1124_p13  ;;  %s714_s4 = sshll.u32 %s785_s3, 4  ;;  %s715_s4 = int_to_ptr.vmem [resolvable:$false] %s714_s4 }
  0x49   : > { %v976_v38 = vstv %s576_s8  ;;  %s716_s14 = scalar_lea.vmem %s715_s4, 2048  ;;  %p717_p9 = scmp.lt.s32.totalorder %s1063_s28, %s715_s4 }
  0x4a   : > { %201 = vmax.xlane.f32.xlu1 %v200_v12  ;;  %v978_v40 = vstv %s572_s17  ;;  %p713_p8 = pneg %p712_p0  ;;  %p718_p10 = scmp.lt.s32.totalorder %s716_s14, %s710_s30 }
  0x4b   : > { %198 = vmax.xlane.f32.xlu0 %v197_v13 }
  0x4c   : > { %p719_p1 = por %p718_p10, %p717_p9 }
  0x4e   : > { %207 = vmax.xlane.f32.xlu1 %v206_v14  ;;  %p720_p2 = pnand %p719_p1, %p713_p8 }
  0x4f   : > { %204 = vmax.xlane.f32.xlu0 %v203_v15 }
  0xcb   : > { %v193_v17 = vpop.xlane.xlu1 %192 }
  0xcc   : > { %v217_v18 = vrot.slane %v193_v17, 7  ;;  %v187_v19 = vpop.xlane.xlu0 %186 }
  0xcd   : > { %v214_v20 = vrot.slane %v187_v19, 7 }
  0xce   : > { %v227_v22 = vsel %vm213_vm0, 0.0, %v217_v18 }
  0xcf   : > { %v226_v24 = vsel %vm213_vm0, 0.0, %v214_v20  ;;  %v196_v25 = vpop.xlane.xlu1 %195  ;;  %v962_v29 = vmul.f32 %v271_v21, %v227_v22  ;;  %v966_v32 = vmul.f32 %v336_v23, %v227_v22  ;;  %v982_v45 = vmul.f32 %v251_v28, %v227_v22 }
  0xd0   : > { %v218_v26 = vrot.slane %v196_v25, 7  ;;  %v190_v27 = vpop.xlane.xlu0 %189  ;;  %v968_v33 = vmul.f32 %v271_v21, %v226_v24  ;;  %v972_v36 = vmul.f32 %v336_v23, %v226_v24  ;;  %v252_v47 = vmul.f32 %v251_v28, %v226_v24 }
  0xd1   : > { %v215_v30 = vrot.slane %v190_v27, 7  ;;  %v290_v46 = vrot.slane %v962_v29, 1  ;;  %v355_v49 = vrot.slane %v966_v32, 2 }
  0xd2   : > { %v219_v34 = vsel %vm213_vm0, %v217_v18, %v218_v26  ;;  %v229_v35 = vsel %vm213_vm0, %v218_v26, 0.0  ;;  %v285_v50 = vrot.slane %v968_v33, 1  ;;  %v350_v54 = vrot.slane %v972_v36, 2 }
  0xd3   : > { %v974_v37 = vmul.f32 %v271_v21, %v219_v34  ;;  %v202_v39 = vpop.xlane.xlu1 %201  ;;  %v277_v41 = vmul.f32 %v271_v21, %v229_v35  ;;  %v216_v42 = vsel %vm213_vm0, %v214_v20, %v215_v30  ;;  %v228_v43 = vsel %vm213_vm0, %v215_v30, 0.0 }
  0xd4   : > { %v235_v44 = vrot.slane %v202_v39, 7  ;;  %v985_v48 = vmul.f32 %v336_v23, %v219_v34  ;;  %v273_v51 = vmul.f32 %v271_v21, %v216_v42  ;;  %v274_v52 = vmul.f32 %v271_v21, %v228_v43  ;;  %v199_v53 = vpop.xlane.xlu0 %198 }
  0xd5   : > { %v338_v55 = vmul.f32 %v336_v23, %v216_v42  ;;  %v339_v56 = vmul.f32 %v336_v23, %v228_v43  ;;  %v991_v59 = vmul.f32 %v251_v28, %v219_v34  ;;  %v291_v60 = vrot.slane %v974_v37, 1 }
  0xd6   : > { %v248_v57 = vsel %vm213_vm0, %v235_v44, 0.0  ;;  %v293_v61 = vrot.slane %v277_v41, 1  ;;  %v994_v62 = vmul.f32 %v336_v23, %v229_v35  ;;  %v356_v63 = vrot.slane %v985_v48, 2 }
  0xd7   : > { %v208_v58 = vpop.xlane.xlu1 %207  ;;  %v253_v3 = vmul.f32 %v251_v28, %v216_v42  ;;  %v307_v7 = vmul.f32 %v964_v31, %v248_v57  ;;  %v234_v10 = vrot.slane %v199_v53, 7  ;;  %v286_v11 = vrot.slane %v273_v51, 1 }
  0xd8   : > { %v288_v12 = vrot.slane %v274_v52, 1  ;;  %v372_v13 = vmul.f32 %v976_v38, %v248_v57  ;;  %v238_v14 = vrot.slane %v208_v58, 7  ;;  %v351_v15 = vrot.slane %v338_v55, 2  ;;  %v205_v41 = vpop.xlane.xlu0 %204 }
  0xd9   : > { %v353_v16 = vrot.slane %v339_v56, 2  ;;  %v320_v17 = vrot.slane %v307_v7, 1  ;;  %v236_v18 = vsel %vm213_vm0, %v234_v10, %v235_v44  ;;  %v246_v19 = vsel %vm213_vm0, 0.0, %v234_v10 }
  0xda   : > { %v263_v20 = vmul.f32 %v978_v40, %v236_v18  ;;  %v306_v21 = vmul.f32 %v964_v31, %v236_v18  ;;  %v371_v22 = vmul.f32 %v976_v38, %v236_v18  ;;  %v262_v23 = vmul.f32 %v978_v40, %v246_v19 }
  0xdb   : > { %v305_v24 = vmul.f32 %v964_v31, %v246_v19  ;;  %v370_v25 = vmul.f32 %v976_v38, %v246_v19  ;;  %v249_v26 = vsel %vm213_vm0, %v238_v14, 0.0  ;;  %v289_v27 = vsel %vm284_vm1, %v286_v11, %v288_v12 }
  0xdc   : > { %v385_v28 = vrot.slane %v372_v13, 2  ;;  %v267_v30 = vadd.f32 %v263_v20, %v253_v3  ;;  %v318_v33 = vrot.slane %v306_v21, 1  ;;  %v266_v34 = vadd.f32 %v262_v23, %v252_v47 }
  0xdd   : > { %v317_v35 = vrot.slane %v305_v24, 1  ;;  %v383_v36 = vrot.slane %v371_v22, 2  ;;  %v310_v39 = vmul.f32 %v964_v31, %v249_v26  ;;  %v287_v42 = vsel %vm284_vm1, %v285_v50, %v286_v11 }
  0xde   : > { %v300_v43 = vadd.f32 %v289_v27, %v267_v30  ;;  %v321_v44 = vsel %vm284_vm1, %v318_v33, %v320_v17  ;;  %v382_v51 = vrot.slane %v370_v25, 2  ;;  %v294_v52 = vsel %vm284_vm1, %v291_v60, %v293_v61 }
  0xdf   : > { %v358_v53 = vrot.slane %v994_v62, 2  ;;  %v299_v55 = vadd.f32 %v287_v42, %v266_v34  ;;  %v319_v47 = vsel %vm284_vm1, %v317_v35, %v318_v33  ;;  %v352_v56 = vsel %vm349_vm2, %v350_v54, %v351_v15 }
  0xe0   : > { %v354_v57 = vsel %vm349_vm2, %v351_v15, %v353_v16  ;;  %v332_v58 = vadd.f32 %v321_v44, %v300_v43  ;;  %v237_v3 = vrot.slane %v205_v41, 7  ;;  %v386_v7 = vsel %vm349_vm2, %v383_v36, %v385_v28 }
  0xe1   : > { %v331_v50 = vadd.f32 %v319_v47, %v299_v55  ;;  %v325_v10 = vrot.slane %v310_v39, 1  ;;  %v375_v11 = vmul.f32 %v976_v38, %v249_v26  ;;  %v384_v61 = vsel %vm349_vm2, %v382_v51, %v383_v36 }
  0xe2   : > { %v365_v12 = vadd.f32 %v354_v57, %v332_v58  ;;  %v239_v62 = vsel %vm213_vm0, %v237_v3, %v238_v14  ;;  %v247_v13 = vsel %vm213_vm0, 0.0, %v237_v3  ;;  %v357_v29 = vsel %vm349_vm2, %v355_v49, %v356_v63 }
  0xe3   : > { %v364_v17 = vadd.f32 %v352_v56, %v331_v50  ;;  %v264_v54 = vmul.f32 %v978_v40, %v247_v13  ;;  %v265_v15 = vmul.f32 %v978_v40, %v239_v62  ;;  %v308_v16 = vmul.f32 %v964_v31, %v247_v13 }
  0xe4   : > { %v397_v18 = vadd.f32 %v386_v7, %v365_v12  ;;  %v309_v19 = vmul.f32 %v964_v31, %v239_v62  ;;  %v373_v20 = vmul.f32 %v976_v38, %v247_v13  ;;  %v374_v21 = vmul.f32 %v976_v38, %v239_v62 }
  0xe5   : > { %v396_v22 = vadd.f32 %v384_v61, %v364_v17  ;;  %v268_v23 = vadd.f32 %v264_v54, %v982_v45  ;;  %v269_v14 = vadd.f32 %v265_v15, %v991_v59  ;;  %v322_v24 = vrot.slane %v308_v16, 1 }
  0xe6   : > { %v578_v25 = vmul.f32 -1.442695, %v397_v18  ;;  %v390_v26 = vrot.slane %v375_v11, 2  ;;  %v292_v40 = vsel %vm284_vm1, %v290_v46, %v291_v60  ;;  %v323_v27 = vrot.slane %v309_v19, 1 }
  0xe7   : > { %v577_v31 = vmul.f32 -1.442695, %v396_v22  ;;  %v301_v28 = vadd.f32 %v292_v40, %v268_v23  ;;  %v302_v30 = vadd.f32 %v294_v52, %v269_v14  ;;  %v387_v33 = vrot.slane %v373_v20, 2 }
  0xe8   : > { %655 = vpow2.f32 %v578_v25  ;;  %v324_v38 = vsel %vm284_vm1, %v322_v24, %v323_v27  ;;  %v326_v45 = vsel %vm284_vm1, %v323_v27, %v325_v10  ;;  %v388_v59 = vrot.slane %v374_v21, 2 }
  0xe9   : > { %657 = vpow2.f32 %v577_v31  ;;  %v333_v34 = vadd.f32 %v324_v38, %v301_v28  ;;  %v334_v35 = vadd.f32 %v326_v45, %v302_v30  ;;  %v359_v37 = vsel %vm349_vm2, %v356_v63, %v358_v53 }
  0xea   : > { %v389_v36 = vsel %vm349_vm2, %v387_v33, %v388_v59  ;;  %v391_v39 = vsel %vm349_vm2, %v388_v59, %v390_v26 }
  0xeb   : > { %v366_v46 = vadd.f32 %v357_v29, %v333_v34  ;;  %v367_v60 = vadd.f32 %v359_v37, %v334_v35 }
  0xed   : > { %v398_v41 = vadd.f32 %v389_v36, %v366_v46  ;;  %v399_v42 = vadd.f32 %v391_v39, %v367_v60 }
  0xef   : > { %v579_v43 = vmul.f32 -1.442695, %v398_v41  ;;  %v580_v44 = vmul.f32 -1.442695, %v399_v42 }
  0xf1   : > { %659 = vpow2.f32 %v579_v43 }
  0xf2   : > { %661 = vpow2.f32 %v580_v44 }
  0xf5   : > { %v656_v51 = vpop.eup %655 }
  0xf6   : > { %v658_v32 = vpop.eup %657  ;;  %v413_v52 = vadd.f32 1.0, %v656_v51 }
  0xf7   : > { %v412_v49 = vadd.f32 1.0, %v658_v32 }
  0xf8   : > { %663 = vrcp.f32 %v413_v52 }
  0xf9   : > { %665 = vrcp.f32 %v412_v49 }
  0xfe   : > { %v660_v48 = vpop.eup %659 }
  0xff   : > { %v662_v63 = vpop.eup %661  ;;  %v414_v53 = vadd.f32 1.0, %v660_v48 }
 0x100   : > { %v415_v55 = vadd.f32 1.0, %v662_v63 }
 0x101   : > { %667 = vrcp.f32 %v414_v53 }
 0x102   : > { %669 = vrcp.f32 %v415_v55 }
 0x105   : > { %v664_v47 = vpop.eup %663 }
 0x106   : > { %v666_v56 = vpop.eup %665  ;;  %431 = vperm.xlu1 %654, %v664_v47  }
 0x107   : > { %426 = vperm.xlu0 %653, %v666_v56  }
 0x10e   : > { %v668_v57 = vpop.eup %667 }
 0x10f   : > { %436 = vperm.xlu1 %654, %v668_v57   ;;  %v670_v58 = vpop.eup %669 }
 0x113   : > { %441 = vperm.xlu1 %654, %v670_v58  }
 0x181   : > { %v432_v3 = vpop.permute.xlu1 %431 }
 0x182   : > { %v446_v50 = vmul.f32 %v432_v3, %v944_v8  ;;  %v447_v7 = vmul.f32 %v432_v3, %v946_v9  ;;  %v427_v10 = vpop.permute.xlu0 %426 }
 0x183   : > { %v444_v11 = vmul.f32 %v427_v10, %v932_v2  ;;  %v445_v12 = vmul.f32 %v427_v10, %v936_v4 }
 0x184   : > { %454 = vst [vmem:[%s174_s19 + $0x10] sm:$0xff] %v446_v50  ;;  %455 = vst [vmem:[%s174_s19 + $0x18] sm:$0xff] %v447_v7 }
 0x185   : > { %452 = vst [vmem:[%s174_s19] sm:$0xff] %v444_v11  ;;  %453 = vst [vmem:[%s174_s19 + $0x8] sm:$0xff] %v445_v12 }
 0x18a   : > { %v437_v61 = vpop.permute.xlu1 %436 }
 0x18b   : > { %v448_v62 = vmul.f32 %v437_v61, %v928_v0  ;;  %v449_v8 = vmul.f32 %v437_v61, %v930_v1 }
 0x18d   : > { %456 = vst [vmem:[%s174_s19 + $0x20] sm:$0xff] %v448_v62  ;;  %457 = vst [vmem:[%s174_s19 + $0x28] sm:$0xff] %v449_v8 }
 0x18e   : > { %v442_v2 = vpop.permute.xlu1 %441 }
 0x18f   : > { %v450_v0 = vmul.f32 %v442_v2, %v938_v5  ;;  %v451_v4 = vmul.f32 %v442_v2, %v940_v6 }
 0x191   : > { %458 = vst [vmem:[%s174_s19 + $0x30] sm:$0xff] %v450_v0  ;;  %459 = vst [vmem:[%s174_s19 + $0x38] sm:$0xff] %v451_v4 }
 0x192   : > { %723 = shalt.err (!%p720_p2)
}
 0x193   : > { %s724_s16 = scalar_lea.hbm %s1061_s29, 1024  ;;  %s728_s23 = scalar_lea.hbm %s1109_s2, 4096 }
 0x194   : > { %p725_p3 = scmp.ne.s32.totalorder %s1061_s29, %s724_s16  ;;  %p729_p4 = scmp.lt.s32.totalorder %s1061_s29, %s1109_s2 }
 0x195   : > { %p730_p6 = scmp.lt.s32.totalorder %s728_s23, %s724_s16 }
 0x196   : > { %p726_p7 = pnand %p725_p3, %p1124_p13 }
 0x197   : > { %p731_p11 = por %p730_p6, %p729_p4 }
 0x198   : > { %p727_p5 = pneg %p726_p7 }
 0x19a   : > { %p732_p12 = pnand %p731_p11, %p727_p5 }
 0x19c   : > { %735 = shalt.err (!%p732_p12)
}
 0x19d   : > { %s786_s8 = smov 256   ;;  %s787_s17 = smov 16  }
 0x19e   : > { %597 = dma.vmem_to_hbm [thread:$0]  (%p1124_p13), %s1063_s28, 1024, %s1061_s29, %s461_s13, %s786_s8, %s786_s8, %s787_s17  }
 0x19f PF: > { %p614_p0 = scmp.ge.s32.totalorder %s778_s12, 2  ;;  %s490_s19 = sand.u32 1, %s766_s9  }
 0x1a0   : > { %p1125_p8 = scmp.ne.s32.totalorder %s1117_s22, 0  ;;  %s491_s25 = scalar_lea.sflag [#allocation4], %s490_s19 }
 0x1a2   : > { %p608_p9 = pnand %p614_p0, %p1125_p8 }
 0x1a4   : > { %p609_p10 = pneg %p608_p9 }
 0x1a6   : > { %761 = dma.done.wait (%p609_p10), %s491_s25, 1024  }
 0x1a7   : > { %763 = vsyncadd (%p609_p10), %s491_s25, 4294966272  ;;  %p16_p1 = scmp.ge.s32.totalorder %s828_s15, 6   ;;  %s1126_s9 = smov %s770_s10 }
 0x1a8   : > { %s1127_s10 = smov %s774_s11  ;;  %s1128_s11 = smov %s840_s18 }
 0x1a9   : > { %s1129_s12 = smov %s828_s15  ;;  %18 = sbr.rel (!%p16_p1) target bundleno = 6 (0x6), region = 78 }
 0x1ae   :  { %496 = vsyncpa [#allocation3], 1 }
 0x1af   :  { %498 = vsyncpa [#allocation3 + $0x1], 1 }
 0x1b0   :  { %499 = vsyncpa [#allocation4], 1 }
 0x1b1   :  { %501 = vsyncpa [#allocation4 + $0x1], 1 }
 0x1b2   :  { %502 = vsyncpa [#allocation5], 1 }
 0x1b3   :  { %504 = vsyncpa [#allocation5 + $0x1], 1 }

</bundles_post_ra>
